<compile_context>
chip_gen: v7x
topology: tpu7x:2x2x1
jax: 0.10.0
libtpu: 0.0.40
codegen_flags: <defaults>
</compile_context>

<pallas_src>
import functools

import jax
import jax.numpy as jnp
from jax.experimental import pallas as pl
from jax.experimental.pallas import tpu as pltpu


def gating_kernel(x_ref, w_ref, b_ref, o_ref):
    # Linear: logits = x_tile @ W^T + b  (W passed pre-transposed as [D, E]).
    logits = jnp.dot(x_ref[...], w_ref[...], preferred_element_type=jnp.float32)
    logits = logits + b_ref[...]  # [1, E] broadcasts over the tile rows

    # Numerically stable softmax over the experts (last) axis, kept in f32.
    m = jnp.max(logits, axis=-1, keepdims=True)
    e = jnp.exp(logits - m)
    denom = jnp.sum(e, axis=-1, keepdims=True)
    # Exact divide: the kernel is x-DMA bound, so the VALU divide is free, and the
    # rows then sum to 1 to float32 precision (the approx EUP reciprocal did not).
    o_ref[...] = (e / denom).astype(o_ref.dtype)


@functools.lru_cache(maxsize=1)
def _vmem_budget():
    """Per-generation (budget for tile sizing, explicit scoped-VMEM limit)."""
    try:
        cap = pltpu.get_tpu_info().vmem_capacity_bytes
    except Exception:
        cap = 64 << 20  # conservative (v7x-sized) fallback
    budget = min(cap // 2, 64 << 20)        # 64 MiB on v5e/v6e (128 MiB), 32 MiB on v7x
    limit = min(cap, budget + (16 << 20))   # explicit scoped limit with headroom
    return budget, limit


def _choose_batch_tile(B, D, E, vmem_budget):
    """Pick a batch tile tb that is either == B (single full-extent block) or a
    multiple of 8, preferring one that divides B (no ragged tail / no padding)."""
    bp = 4  # float32 bytes
    # weight + bias are double-buffered by the default pipeliner -> count them twice.
    resident = 2 * D * E * bp + 2 * E * bp

    def fits(tb):
        return resident + 2 * tb * (D + E) * bp <= vmem_budget

    cap = 1024
    while cap > 8 and not fits(cap):
        cap //= 2            # stays a power of two >= 8 (so always a multiple of 8)
    cap = max(cap, 8)

    if B <= cap:
        # Whole batch fits: use two grid steps when cheaply possible so both
        # TensorCores get work on v7x, otherwise one full-extent block.
        if B >= 16 and B % 16 == 0:
            return B // 2    # multiple of 8, divides B -> 2 steps
        return B             # full array extent is always a legal block dim

    # Large batch: largest multiple-of-8 divisor of B that fits (no ragged tail).
    if B % 8 == 0:
        for t in range(cap, 7, -8):
            if B % t == 0:
                return t
    # Rare fallback (B not a multiple of 8 and bigger than one tile): ragged last
    # block — Pallas masks the out-of-bounds rows, no pad / extra HBM pass needed.
    return cap


@functools.partial(jax.jit, static_argnames=("tb", "vmem_limit"))
def _gating_fwd(x, w_t, b2d, *, tb, vmem_limit):
    B, D = x.shape
    E = w_t.shape[1]
    grid = (pl.cdiv(B, tb),)

    return pl.pallas_call(
        gating_kernel,
        out_shape=jax.ShapeDtypeStruct((B, E), jnp.float32),
        grid_spec=pltpu.PrefetchScalarGridSpec(
            num_scalar_prefetch=0,
            grid=grid,
            in_specs=[
                pl.BlockSpec((tb, D), lambda i: (i, 0)),  # x: tiled over batch (pipelined)
                pl.BlockSpec((D, E), lambda i: (0, 0)),   # weight: resident across tiles
                pl.BlockSpec((1, E), lambda i: (0, 0)),   # bias: resident
            ],
            out_specs=pl.BlockSpec((tb, E), lambda i: (i, 0)),
        ),
        compiler_params=pltpu.CompilerParams(
            # Independent batch tiles -> shard grid steps across both TCs on v7x.
            dimension_semantics=("parallel",),
            vmem_limit_bytes=vmem_limit,
        ),
        cost_estimate=pl.CostEstimate(
            flops=2 * B * D * E,
            transcendentals=B * E,
            bytes_accessed=B * D * 4 + D * E * 4 + E * 4 + B * E * 4,
        ),
    )(x, w_t, b2d)


class GatingNetworkPallas:
    """Pallas port of the PyTorch GatingNetwork (Linear -> Softmax(dim=1)).

    Weight transpose / bias reshape are done once at construction so they are not
    re-materialized in HBM on every forward call.
    """

    def __init__(self, weight, bias):
        # weight: [num_experts, input_dim] (PyTorch nn.Linear layout); bias: [num_experts]
        self.w_t = jnp.asarray(weight, jnp.float32).T             # [D, E]
        self.b2d = jnp.asarray(bias, jnp.float32).reshape(1, -1)  # [1, E]

    def __call__(self, x):
        x = jnp.asarray(x, jnp.float32)
        B, D = x.shape
        E = self.w_t.shape[1]
        budget, limit = _vmem_budget()
        tb = _choose_batch_tile(B, D, E, budget)
        return _gating_fwd(x, self.w_t, self.b2d, tb=tb, vmem_limit=limit)


if __name__ == "__main__":
    # Small shapes consistent with the module: batch=8, input_dim=32, num_experts=4
    B, D, E = 8, 32, 4
    key = jax.random.PRNGKey(0)
    kx, kw, kb = jax.random.split(key, 3)

    x = jax.random.normal(kx, (B, D), dtype=jnp.float32)
    # Deterministic parameter init (mimics nn.Linear uniform(-1/sqrt(D), 1/sqrt(D)))
    bound = 1.0 / (D ** 0.5)
    weight = jax.random.uniform(kw, (E, D), dtype=jnp.float32, minval=-bound, maxval=bound)
    bias = jax.random.uniform(kb, (E,), dtype=jnp.float32, minval=-bound, maxval=bound)

    gate = GatingNetworkPallas(weight, bias)
    out = gate(x)
    jax.block_until_ready(out)

    # Cross-check against plain-JAX reference (linear + softmax over experts axis).
    ref = jax.nn.softmax(x @ weight.T + bias, axis=1)
    assert out.shape == (B, E)
    assert jnp.allclose(out, ref, atol=2e-3, rtol=2e-3)
    # Exact divide in the epilogue -> rows sum to 1 to float32 precision.
    assert jnp.allclose(jnp.sum(out, axis=1), 1.0, atol=1e-4)

    print("KERNEL_OK")
</pallas_src>

<mosaic_0001>
module attributes {stable_mosaic.version = 11 : i64} {
  func.func @gating_kernel(%arg0: i32, %arg1: memref<8x32xf32, #tpu.memory_space<vmem>>, %arg2: memref<32x4xf32, #tpu.memory_space<vmem>>, %arg3: memref<1x4xf32, #tpu.memory_space<vmem>>, %arg4: memref<8x4xf32, #tpu.memory_space<vmem>>) attributes {dimension_semantics = [#tpu.dimension_semantics<parallel>], iteration_bounds = array<i64: 1>, scalar_prefetch = 0 : i64, scratch_operands = 0 : i64, tpu.core_type = #tpu.core_type<tc>, window_params = [{transform_indices = @transform_0, window_bounds = array<i64: 8, 32>}, {pipeline_mode = #tpu.pipeline_mode<synchronous>, transform_indices = @transform_1, window_bounds = array<i64: 32, 4>}, {pipeline_mode = #tpu.pipeline_mode<synchronous>, transform_indices = @transform_2, window_bounds = array<i64: 1, 4>}, {transform_indices = @transform_3, window_bounds = array<i64: 8, 4>}]} {
    %c0 = arith.constant 0 : index
    %c0_0 = arith.constant 0 : index
    %0 = vector.load %arg1[%c0, %c0_0] : memref<8x32xf32, #tpu.memory_space<vmem>>, vector<8x32xf32>
    %c0_1 = arith.constant 0 : index
    %c0_2 = arith.constant 0 : index
    %1 = vector.load %arg2[%c0_1, %c0_2] : memref<32x4xf32, #tpu.memory_space<vmem>>, vector<32x4xf32>
    %cst = arith.constant dense<0.000000e+00> : vector<8x4xf32>
    %2 = tpu.matmul %0, %1, %cst {dimension_numbers = #tpu.dot_dimension_numbers<[1], [0], [0], [1], [0, 0, 1, 1], [], []>} : vector<8x32xf32>, vector<32x4xf32>, vector<8x4xf32> -> vector<8x4xf32>
    %c0_3 = arith.constant 0 : index
    %c0_4 = arith.constant 0 : index
    %3 = vector.load %arg3[%c0_3, %c0_4] : memref<1x4xf32, #tpu.memory_space<vmem>>, vector<1x4xf32>
    %4 = vector.broadcast %3 : vector<1x4xf32> to vector<8x4xf32>
    %5 = arith.addf %2, %4 : vector<8x4xf32>
    %cst_5 = arith.constant dense<0xFF800000> : vector<8xf32>
    %6 = vector.multi_reduction <maximumf>, %5, %cst_5 [1] : vector<8x4xf32> to vector<8xf32>
    %7 = vector.shape_cast %6 : vector<8xf32> to vector<8x1xf32>
    %8 = vector.broadcast %7 : vector<8x1xf32> to vector<8x4xf32>
    %9 = arith.subf %5, %8 : vector<8x4xf32>
    %10 = math.exp %9 : vector<8x4xf32>
    %cst_6 = arith.constant dense<0.000000e+00> : vector<8xf32>
    %11 = vector.multi_reduction <add>, %10, %cst_6 [1] : vector<8x4xf32> to vector<8xf32>
    %12 = vector.shape_cast %11 : vector<8xf32> to vector<8x1xf32>
    %13 = vector.broadcast %12 : vector<8x1xf32> to vector<8x4xf32>
    %14 = arith.divf %10, %13 : vector<8x4xf32>
    %c0_7 = arith.constant 0 : index
    %c0_8 = arith.constant 0 : index
    %15 = vector.load %arg4[%c0_7, %c0_8] : memref<8x4xf32, #tpu.memory_space<vmem>>, vector<8x4xf32>
    tpu.vector_store %arg4[%c0_7, %c0_8], %14 {strides = array<i32>} : memref<8x4xf32, #tpu.memory_space<vmem>>, vector<8x4xf32>,
    return
  }
  func.func @transform_0(%arg0: i32) -> (i32, i32) {
    %c0_i32 = arith.constant 0 : i32
    %c0_i32_0 = arith.constant 0 : i32
    return %arg0, %c0_i32 : i32, i32
  }
  func.func @transform_1(%arg0: i32) -> (i32, i32) {
    %c0_i32 = arith.constant 0 : i32
    %c0_i32_0 = arith.constant 0 : i32
    %c0_i32_1 = arith.constant 0 : i32
    return %c0_i32, %c0_i32_0 : i32, i32
  }
  func.func @transform_2(%arg0: i32) -> (i32, i32) {
    %c0_i32 = arith.constant 0 : i32
    %c0_i32_0 = arith.constant 0 : i32
    %c0_i32_1 = arith.constant 0 : i32
    return %c0_i32, %c0_i32_0 : i32, i32
  }
  func.func @transform_3(%arg0: i32) -> (i32, i32) {
    %c0_i32 = arith.constant 0 : i32
    %c0_i32_0 = arith.constant 0 : i32
    return %arg0, %c0_i32 : i32, i32
  }
}

</mosaic_0001>

<bundles_post_ra>
// kernel: _gating_fwd.1
= control target key start
LH: loop header
LB: loop body
LE: loop exit
PB: predicated region body
PF: predicated region fallthrough
CT: control target
= control target key end

     0   :  { %v148_v0 = vmov 0.0|0.0   ;;  %vm149_vm0 = vmmov 0   ;;  %v150_v4 = vmov 0.0   ;;  %vm26_vm1 = vcmask 261120   ;;  %s195_s1 = inlined_call_operand.vmem [shape: f32[32,4], index: 1, kind: input, shape index: {}]   ;;  %s196_s0 = inlined_call_operand.vmem [shape: f32[8,32], index: 0, kind: input, shape index: {}]   ;;  %s197_s2 = inlined_call_operand.vmem [shape: f32[1,4], index: 2, kind: input, shape index: {}]   ;;  %s198_s3 = inlined_call_operand.vmem [shape: f32[8,4], index: 3, kind: output, shape index: {}]  }
   0x1   :  { %135 = vmatprep.subr.bf16.mxu0 %v148_v0  ;;  %v15_v1 = vld [vmem:[%s195_s1] sm:$0xff]  ;;  %v16_v2 = vld [vmem:[%s195_s1 + $0x8] sm:$0xff]  ;;  %v17_v3 = vld [vmem:[%s195_s1 + $0x10] sm:$0xff]  ;;  %132 = vmatprep.mubr.msk.f32.mxu0 %vm149_vm0, %v150_v4  ;;  %vm100_vm2 = vcmask 31744  }
   0x2   :  { %v136_v5 = vpack.c.bf16 %v16_v2, %v15_v1  ;;  %v18_v6 = vld [vmem:[%s195_s1 + $0x18] sm:$0xff]  ;;  %v14_v8 = vld [vmem:[%s196_s0] sm:$0xff] }
   0x3   :  { %v139_v7 = vpack.c.bf16 %v18_v6, %v17_v3  ;;  %v117_v9 = vld [vmem:[%s197_s2] ss:$0 sm:$0xff] }
   0x4   :  { %137 = vmatpush3.bf16.msra.mxu0 %v136_v5 }
   0x5   :  { %138 = vmatprep.subr.bf16.mxu0 %v148_v0 }
   0x8   :  { %140 = vmatpush3.bf16.msra.mxu0 %v139_v7 }
   0xb   :  { %133 = vmatmul.mubr.msk.f32.vlgmr.msra.gmra.mrb[0].mxu0 %vm26_vm1, %v14_v8 }
  0xde   :  { %v96_v10 = vpop.f32.mrb[0].mxu0 }
  0xdf   :  { %v97_v11 = vadd.f32 %v117_v9, %v96_v10  ;;  %v134_v12 = vpop.f32.mrb[1].mxu0 }
  0xe1   :  { %v101_v13 = vsel %vm100_vm2, %v97_v11, -inf }
  0xe2   :  { %102 = vmax.xlane.f32.xlu0 %v101_v13 }
 0x16f   :  { %v103_v14 = vpop.xlane.xlu0 %102 }
 0x170   :  { %v104_v15 = vsub.f32 %v97_v11, %v103_v14 }
 0x172   :  { %v105_v16 = vmul.f32 1.442695, %v104_v15 }
 0x174   :  { %144 = vpow2.f32 %v105_v16 }
 0x17e   :  { %v145_v17 = vpop.eup %144 }
 0x17f   :  { %v107_v18 = vsel %vm100_vm2, %v145_v17, 0.0 }
 0x180   :  { %108 = vadd.xlane.f32.xlu0 %v107_v18 }
 0x20d   :  { %v109_v19 = vpop.xlane.xlu0 %108 }
 0x20e   :  { %146 = vrcp.f32 %v109_v19 }
 0x218   :  { %v147_v20 = vpop.eup %146 }
 0x219   :  { %v111_v21 = vmul.f32 %v147_v20, %v145_v17 }
 0x21b   :  { %112 = vst.msk [vmem:[%s198_s3] sm:$0xff] %vm100_vm2, %v111_v21 }

</bundles_post_ra>
